<compile_context>
chip_gen: v7x
topology: tpu7x:2x2x1
jax: 0.10.0
libtpu: 0.0.40
codegen_flags: <defaults>
</compile_context>

<pallas_src>
import functools

import jax
import jax.numpy as jnp
from jax.experimental import pallas as pl
from jax.experimental.pallas import tpu as pltpu


def _round_up(x, m):
    return ((x + m - 1) // m) * m


# ----------------------------------------------------------------------------
# Pallas kernel (batch on lanes):
#   layer 0: acc = W0_cont^T @ cont + sum_i T_i^T @ onehot(cat_i) + b0 ; relu
#   hidden : x = relu(W_l^T @ x + b_l)
#   final  : out^T = W_L^T @ x + b_L
# ----------------------------------------------------------------------------
def _make_kernel(n_cat, n_rest, compute_dtype):
    def kernel(*refs):
        xcat_ref, xcont_ref, w0c_ref, b0_ref = refs[0:4]
        t_refs = refs[4:4 + n_cat]
        rest = refs[4 + n_cat:]
        out_ref = rest[-1]
        layer_refs = rest[:-1]                     # (W^T, b) pairs, 2 * n_rest refs

        tile_b = xcat_ref.shape[1]

        # Continuous part of the (BN-folded) first Linear.
        cont = xcont_ref[...]                                       # (n_cont, tile_b)
        acc = jnp.dot(w0c_ref[...], cont,
                      preferred_element_type=jnp.float32)           # (h0, tile_b) f32

        # Categorical part: embedding tables pre-multiplied into W0, "gather"
        # done as a one-hot MXU matmul (exact selection, lane-dense result).
        for i in range(n_cat):
            idx = xcat_ref[pl.ds(i, 1), :]                          # (1, tile_b) int32
            n_i = t_refs[i].shape[1]
            onehot = (jax.lax.broadcasted_iota(jnp.int32, (n_i, tile_b), 0)
                      == idx).astype(compute_dtype)                 # (n_i, tile_b)
            acc = acc + jnp.dot(t_refs[i][...], onehot,
                                preferred_element_type=jnp.float32)

        acc = acc + b0_ref[...]                                     # bias (h0, 1) f32
        x = jnp.maximum(acc, 0.0).astype(compute_dtype)

        for li in range(n_rest):
            w_ref = layer_refs[2 * li]
            b_ref = layer_refs[2 * li + 1]
            h = jnp.dot(w_ref[...], x, preferred_element_type=jnp.float32) + b_ref[...]
            if li + 1 < n_rest:
                x = jnp.maximum(h, 0.0).astype(compute_dtype)
            else:
                out_ref[...] = h.astype(out_ref.dtype)

    return kernel


@functools.partial(jax.jit, static_argnames=("tile_b", "compute_dtype"))
def tabular_forward(tabTs, w0_cont_T, b0, WTs, bs, x_cat, x_cont, *,
                    tile_b=None, compute_dtype=jnp.bfloat16):
    """Full TabularModel forward with folded params (one fused pallas_call)."""
    B, n_cat = x_cat.shape
    n_cont = x_cont.shape[1]
    out_sz = WTs[-1].shape[0]

    # Batch tile: large (amortize per-step overhead), lane- and MXU-friendly.
    if tile_b is None:
        tile_b = min(4096, max(256, _round_up(B, 256)))
    tile_b = max(128, _round_up(tile_b, 128))
    b_pad = _round_up(B, tile_b)

    # Inputs transposed so batch is the lane (last) axis; pad batch to tile.
    x_cat_T = x_cat.T.astype(jnp.int32)                    # (n_cat, B)
    x_cont_T = x_cont.T.astype(compute_dtype)              # (n_cont, B)
    if b_pad != B:
        x_cat_T = jnp.pad(x_cat_T, ((0, 0), (0, b_pad - B)))
        x_cont_T = jnp.pad(x_cont_T, ((0, 0), (0, b_pad - B)))

    # Params: weights/tables streamed in compute dtype, biases stay f32.
    tabTs_c = [t.astype(compute_dtype) for t in tabTs]      # (h0, n_i)
    w0c_c = w0_cont_T.astype(compute_dtype)                 # (h0, n_cont)
    b0_c = b0.astype(jnp.float32)                           # (h0, 1)
    WTs_c = [w.astype(compute_dtype) for w in WTs]          # (n_out, n_in)
    bs_c = [b.astype(jnp.float32) for b in bs]              # (n_out, 1)

    args = [x_cat_T, x_cont_T, w0c_c, b0_c] + tabTs_c
    in_specs = [
        pl.BlockSpec((n_cat, tile_b), lambda i: (0, i)),
        pl.BlockSpec((n_cont, tile_b), lambda i: (0, i)),
        pl.BlockSpec(w0c_c.shape, lambda i: (0, 0)),
        pl.BlockSpec(b0_c.shape, lambda i: (0, 0)),
    ]
    in_specs += [pl.BlockSpec(t.shape, lambda i: (0, 0)) for t in tabTs_c]
    for w, b in zip(WTs_c, bs_c):
        args += [w, b]
        # Constant block index -> resident in VMEM, fetched once.
        in_specs += [pl.BlockSpec(w.shape, lambda i: (0, 0)),
                     pl.BlockSpec(b.shape, lambda i: (0, 0))]

    # VMEM budget: resident params + double-buffered input tiles + output tiles.
    itemsize = jnp.dtype(compute_dtype).itemsize
    param_bytes = ((w0c_c.size + sum(t.size for t in tabTs_c)
                    + sum(w.size for w in WTs_c)) * itemsize
                   + (b0_c.size + sum(b.size for b in bs_c)) * 4)
    stream_bytes = (2 * (n_cat * tile_b * 4 + n_cont * tile_b * itemsize)
                    + 2 * (out_sz * tile_b * 4))
    vmem_limit = int(min(max(param_bytes + stream_bytes + (8 << 20), 32 << 20),
                         48 << 20))

    out_t = pl.pallas_call(
        _make_kernel(n_cat, len(WTs_c), compute_dtype),
        grid=(pl.cdiv(b_pad, tile_b),),
        in_specs=in_specs,
        out_specs=pl.BlockSpec((out_sz, tile_b), lambda i: (0, i)),
        out_shape=jax.ShapeDtypeStruct((out_sz, b_pad), jnp.float32),
        compiler_params=pltpu.CompilerParams(
            dimension_semantics=("parallel",),
            vmem_limit_bytes=vmem_limit,
        ),
    )(*args)

    return out_t[:, :B].T                                     # (B, out_sz)


# ----------------------------------------------------------------------------
# Parameter construction (deterministic, synthetic) + BN / embedding folding
# ----------------------------------------------------------------------------
def build_params(key, emb_szs, n_cont, out_sz, layers):
    keys = jax.random.split(key, 64)
    ki = iter(range(64))

    emb_tables = [
        jax.random.normal(keys[next(ki)], (ni, nf), dtype=jnp.float32) * 0.1
        for (ni, nf) in emb_szs
    ]

    n_emb = sum(nf for _, nf in emb_szs)
    d_in = n_emb + n_cont
    eps = 1e-5

    # BatchNorm1d(n_cont), eval mode -> affine over the cont slice only.
    gamma_c = 1.0 + 0.1 * jax.random.normal(keys[next(ki)], (n_cont,), dtype=jnp.float32)
    beta_c = 0.1 * jax.random.normal(keys[next(ki)], (n_cont,), dtype=jnp.float32)
    rmean_c = 0.1 * jax.random.normal(keys[next(ki)], (n_cont,), dtype=jnp.float32)
    rvar_c = jnp.abs(1.0 + 0.1 * jax.random.normal(keys[next(ki)], (n_cont,), dtype=jnp.float32))
    cont_scale = gamma_c / jnp.sqrt(rvar_c + eps)
    cont_shift = beta_c - rmean_c * cont_scale

    in_scale = jnp.concatenate([jnp.ones((n_emb,), jnp.float32), cont_scale]).reshape(1, d_in)
    in_shift = jnp.concatenate([jnp.zeros((n_emb,), jnp.float32), cont_shift]).reshape(1, d_in)

    # Hidden blocks: Linear -> ReLU -> BatchNorm1d (eval) -> Dropout(identity).
    hidden_params = []
    sizes = [d_in] + list(layers)
    for (n_i, n_o) in zip(sizes[:-1], sizes[1:]):
        w = jax.random.normal(keys[next(ki)], (n_i, n_o), dtype=jnp.float32) * (1.0 / jnp.sqrt(n_i))
        b = 0.01 * jax.random.normal(keys[next(ki)], (1, n_o), dtype=jnp.float32)
        gamma = 1.0 + 0.1 * jax.random.normal(keys[next(ki)], (n_o,), dtype=jnp.float32)
        beta = 0.1 * jax.random.normal(keys[next(ki)], (n_o,), dtype=jnp.float32)
        rmean = 0.1 * jax.random.normal(keys[next(ki)], (n_o,), dtype=jnp.float32)
        rvar = jnp.abs(1.0 + 0.1 * jax.random.normal(keys[next(ki)], (n_o,), dtype=jnp.float32))
        bn_scale = (gamma / jnp.sqrt(rvar + eps)).reshape(1, n_o)
        bn_shift = (beta - rmean * (gamma / jnp.sqrt(rvar + eps))).reshape(1, n_o)
        hidden_params.append((w, b, bn_scale, bn_shift))

    n_last = layers[-1]
    out_w = jax.random.normal(keys[next(ki)], (n_last, out_sz), dtype=jnp.float32) * (1.0 / jnp.sqrt(n_last))
    out_b = 0.01 * jax.random.normal(keys[next(ki)], (1, out_sz), dtype=jnp.float32)

    return emb_tables, in_scale, in_shift, hidden_params, out_w, out_b


def fold_params(in_scale, in_shift, hidden_params, out_w, out_b):
    """Fold every eval-mode BN affine into the following Linear."""
    Ws, bs = [], []
    scale, shift = in_scale, in_shift            # affine applied BEFORE the next Linear
    for (w, b, s, t) in hidden_params:
        Ws.append(w * scale.reshape(-1, 1))      # diag(scale) @ W
        bs.append(b + shift @ w)
        scale, shift = s, t                      # post-ReLU BN folds into the NEXT Linear
    Ws.append(out_w * scale.reshape(-1, 1))
    bs.append(out_b + shift @ out_w)
    return Ws, bs


def fold_and_split(emb_tables, emb_szs, in_scale, in_shift, hidden_params, out_w, out_b):
    """BN-fold, then fold each embedding table into the first Linear and
    transpose everything for the batch-on-lanes kernel layout."""
    Ws, bs = fold_params(in_scale, in_shift, hidden_params, out_w, out_b)
    W0, b0 = Ws[0], bs[0]                        # (d_in, h0), (1, h0)

    tabTs = []
    r = 0
    for tbl, (_, nf) in zip(emb_tables, emb_szs):
        T = tbl @ W0[r:r + nf]                   # (n_i, h0)  exact: row i == E_i[i] @ W0g
        tabTs.append(T.T)                        # (h0, n_i)
        r += nf
    w0_cont_T = W0[r:].T                         # (h0, n_cont)
    b0_col = b0.reshape(-1, 1)                   # (h0, 1)

    WTs = [w.T for w in Ws[1:]]                  # (n_out, n_in)
    b_cols = [b.reshape(-1, 1) for b in bs[1:]]  # (n_out, 1)
    return tabTs, w0_cont_T, b0_col, WTs, b_cols


def reference_forward(emb_tables, in_scale, in_shift, hidden_params, out_w, out_b,
                      x_cat, x_cont):
    """Pure-JAX, unfolded reference (mirrors the PyTorch eval-mode forward)."""
    embs = [jnp.take(tbl, x_cat[:, i], axis=0) for i, tbl in enumerate(emb_tables)]
    x = jnp.concatenate(embs + [x_cont.astype(jnp.float32)], axis=1)
    x = x * in_scale + in_shift
    for (w, b, s, t) in hidden_params:
        x = jnp.maximum(x @ w + b, 0.0) * s + t
    return x @ out_w + out_b


# ----------------------------------------------------------------------------
if __name__ == "__main__":
    key = jax.random.PRNGKey(0)

    # Small synthetic config consistent with the module's __init__ signature.
    emb_szs = [(10, 4), (12, 6), (7, 3)]   # (num_categories, emb_dim)
    n_cont = 5
    layers = [32, 16]
    out_sz = 4

    k_param, k_data1, k_data2 = jax.random.split(key, 3)
    emb_tables, in_scale, in_shift, hidden_params, out_w, out_b = build_params(
        k_param, emb_szs, n_cont, out_sz, layers
    )
    tabTs, w0_cont_T, b0_col, WTs, b_cols = fold_and_split(
        emb_tables, emb_szs, in_scale, in_shift, hidden_params, out_w, out_b
    )

    def make_inputs(k, batch):
        kc, kf = jax.random.split(k)
        cat_keys = jax.random.split(kc, len(emb_szs))
        x_cat = jnp.stack(
            [jax.random.randint(cat_keys[i], (batch,), 0, emb_szs[i][0])
             for i in range(len(emb_szs))], axis=1)                      # (B, n_cat) int32
        x_cont = jax.random.normal(kf, (batch, n_cont), dtype=jnp.float32)
        return x_cat, x_cont

    # 1) Small batch, f32 compute, auto tile (exercises batch padding, 1 grid step).
    x_cat, x_cont = make_inputs(k_data1, 40)
    ref = reference_forward(emb_tables, in_scale, in_shift, hidden_params,
                            out_w, out_b, x_cat, x_cont)
    out_f32 = tabular_forward(tabTs, w0_cont_T, b0_col, WTs, b_cols, x_cat, x_cont,
                              compute_dtype=jnp.float32)
    out_f32 = jax.block_until_ready(out_f32)
    assert out_f32.shape == (40, out_sz)
    assert jnp.allclose(out_f32, ref, atol=2e-3, rtol=2e-3), \
        "Pallas f32 output mismatch vs JAX reference"

    # 2) Larger batch, bf16 streaming, explicit tile -> multi-step pipelined grid.
    x_cat2, x_cont2 = make_inputs(k_data2, 1000)
    ref2 = reference_forward(emb_tables, in_scale, in_shift, hidden_params,
                             out_w, out_b, x_cat2, x_cont2)
    out_bf16 = tabular_forward(tabTs, w0_cont_T, b0_col, WTs, b_cols, x_cat2, x_cont2,
                               tile_b=256, compute_dtype=jnp.bfloat16)
    out_bf16 = jax.block_until_ready(out_bf16)
    assert out_bf16.shape == (1000, out_sz)
    assert jnp.allclose(out_bf16, ref2, atol=5e-2, rtol=5e-2), \
        "Pallas bf16 output mismatch vs JAX reference"

    print("KERNEL_OK")
</pallas_src>

<mosaic_0001>
module attributes {stable_mosaic.version = 11 : i64} {
  func.func @kernel(%arg0: i32, %arg1: memref<3x256xi32, #tpu.memory_space<vmem>>, %arg2: memref<5x256xf32, #tpu.memory_space<vmem>>, %arg3: memref<32x5xf32, #tpu.memory_space<vmem>>, %arg4: memref<32x1xf32, #tpu.memory_space<vmem>>, %arg5: memref<32x10xf32, #tpu.memory_space<vmem>>, %arg6: memref<32x12xf32, #tpu.memory_space<vmem>>, %arg7: memref<32x7xf32, #tpu.memory_space<vmem>>, %arg8: memref<16x32xf32, #tpu.memory_space<vmem>>, %arg9: memref<16x1xf32, #tpu.memory_space<vmem>>, %arg10: memref<4x16xf32, #tpu.memory_space<vmem>>, %arg11: memref<4x1xf32, #tpu.memory_space<vmem>>, %arg12: memref<4x256xf32, #tpu.memory_space<vmem>>) attributes {dimension_semantics = [#tpu.dimension_semantics<parallel>], iteration_bounds = array<i64: 1>, scalar_prefetch = 0 : i64, scratch_operands = 0 : i64, tpu.core_type = #tpu.core_type<tc>, window_params = [{transform_indices = @transform_0, window_bounds = array<i64: 3, 256>}, {transform_indices = @transform_1, window_bounds = array<i64: 5, 256>}, {pipeline_mode = #tpu.pipeline_mode<synchronous>, transform_indices = @transform_2, window_bounds = array<i64: 32, 5>}, {pipeline_mode = #tpu.pipeline_mode<synchronous>, transform_indices = @transform_3, window_bounds = array<i64: 32, 1>}, {pipeline_mode = #tpu.pipeline_mode<synchronous>, transform_indices = @transform_4, window_bounds = array<i64: 32, 10>}, {pipeline_mode = #tpu.pipeline_mode<synchronous>, transform_indices = @transform_5, window_bounds = array<i64: 32, 12>}, {pipeline_mode = #tpu.pipeline_mode<synchronous>, transform_indices = @transform_6, window_bounds = array<i64: 32, 7>}, {pipeline_mode = #tpu.pipeline_mode<synchronous>, transform_indices = @transform_7, window_bounds = array<i64: 16, 32>}, {pipeline_mode = #tpu.pipeline_mode<synchronous>, transform_indices = @transform_8, window_bounds = array<i64: 16, 1>}, {pipeline_mode = #tpu.pipeline_mode<synchronous>, transform_indices = @transform_9, window_bounds = array<i64: 4, 16>}, {pipeline_mode = #tpu.pipeline_mode<synchronous>, transform_indices = @transform_10, window_bounds = array<i64: 4, 1>}, {transform_indices = @transform_11, window_bounds = array<i64: 4, 256>}]} {
    %c0 = arith.constant 0 : index
    %c0_0 = arith.constant 0 : index
    %0 = vector.load %arg2[%c0, %c0_0] : memref<5x256xf32, #tpu.memory_space<vmem>>, vector<5x256xf32>
    %c0_1 = arith.constant 0 : index
    %c0_2 = arith.constant 0 : index
    %1 = vector.load %arg3[%c0_1, %c0_2] : memref<32x5xf32, #tpu.memory_space<vmem>>, vector<32x5xf32>
    %cst = arith.constant dense<0.000000e+00> : vector<32x256xf32>
    %2 = tpu.matmul %1, %0, %cst {dimension_numbers = #tpu.dot_dimension_numbers<[1], [0], [0], [1], [0, 0, 1, 1], [], []>} : vector<32x5xf32>, vector<5x256xf32>, vector<32x256xf32> -> vector<32x256xf32>
    %c0_3 = arith.constant 0 : index
    %c0_4 = arith.constant 0 : index
    %3 = vector.load %arg1[%c0_3, %c0_4] : memref<3x256xi32, #tpu.memory_space<vmem>>, vector<1x256xi32>
    %4 = tpu.iota {dimensions = array<i32: 0>} : vector<10x256xi32>
    %5 = vector.broadcast %3 : vector<1x256xi32> to vector<10x256xi32>
    %6 = arith.cmpi eq, %4, %5 : vector<10x256xi32>
    %7 = arith.extui %6 : vector<10x256xi1> to vector<10x256xi32>
    %8 = arith.sitofp %7 : vector<10x256xi32> to vector<10x256xf32>
    %c0_5 = arith.constant 0 : index
    %c0_6 = arith.constant 0 : index
    %9 = vector.load %arg5[%c0_5, %c0_6] : memref<32x10xf32, #tpu.memory_space<vmem>>, vector<32x10xf32>
    %cst_7 = arith.constant dense<0.000000e+00> : vector<32x256xf32>
    %10 = tpu.matmul %9, %8, %cst_7 {dimension_numbers = #tpu.dot_dimension_numbers<[1], [0], [0], [1], [0, 0, 1, 1], [], []>} : vector<32x10xf32>, vector<10x256xf32>, vector<32x256xf32> -> vector<32x256xf32>
    %11 = arith.addf %2, %10 : vector<32x256xf32>
    %c1 = arith.constant 1 : index
    %c0_8 = arith.constant 0 : index
    %12 = vector.load %arg1[%c1, %c0_8] : memref<3x256xi32, #tpu.memory_space<vmem>>, vector<1x256xi32>
    %13 = tpu.iota {dimensions = array<i32: 0>} : vector<12x256xi32>
    %14 = vector.broadcast %12 : vector<1x256xi32> to vector<12x256xi32>
    %15 = arith.cmpi eq, %13, %14 : vector<12x256xi32>
    %16 = arith.extui %15 : vector<12x256xi1> to vector<12x256xi32>
    %17 = arith.sitofp %16 : vector<12x256xi32> to vector<12x256xf32>
    %c0_9 = arith.constant 0 : index
    %c0_10 = arith.constant 0 : index
    %18 = vector.load %arg6[%c0_9, %c0_10] : memref<32x12xf32, #tpu.memory_space<vmem>>, vector<32x12xf32>
    %cst_11 = arith.constant dense<0.000000e+00> : vector<32x256xf32>
    %19 = tpu.matmul %18, %17, %cst_11 {dimension_numbers = #tpu.dot_dimension_numbers<[1], [0], [0], [1], [0, 0, 1, 1], [], []>} : vector<32x12xf32>, vector<12x256xf32>, vector<32x256xf32> -> vector<32x256xf32>
    %20 = arith.addf %11, %19 : vector<32x256xf32>
    %c2 = arith.constant 2 : index
    %c0_12 = arith.constant 0 : index
    %21 = vector.load %arg1[%c2, %c0_12] : memref<3x256xi32, #tpu.memory_space<vmem>>, vector<1x256xi32>
    %22 = tpu.iota {dimensions = array<i32: 0>} : vector<7x256xi32>
    %23 = vector.broadcast %21 : vector<1x256xi32> to vector<7x256xi32>
    %24 = arith.cmpi eq, %22, %23 : vector<7x256xi32>
    %25 = arith.extui %24 : vector<7x256xi1> to vector<7x256xi32>
    %26 = arith.sitofp %25 : vector<7x256xi32> to vector<7x256xf32>
    %c0_13 = arith.constant 0 : index
    %c0_14 = arith.constant 0 : index
    %27 = vector.load %arg7[%c0_13, %c0_14] : memref<32x7xf32, #tpu.memory_space<vmem>>, vector<32x7xf32>
    %cst_15 = arith.constant dense<0.000000e+00> : vector<32x256xf32>
    %28 = tpu.matmul %27, %26, %cst_15 {dimension_numbers = #tpu.dot_dimension_numbers<[1], [0], [0], [1], [0, 0, 1, 1], [], []>} : vector<32x7xf32>, vector<7x256xf32>, vector<32x256xf32> -> vector<32x256xf32>
    %29 = arith.addf %20, %28 : vector<32x256xf32>
    %c0_16 = arith.constant 0 : index
    %c0_17 = arith.constant 0 : index
    %30 = vector.load %arg4[%c0_16, %c0_17] : memref<32x1xf32, #tpu.memory_space<vmem>>, vector<32x1xf32>
    %31 = vector.broadcast %30 : vector<32x1xf32> to vector<32x256xf32>
    %32 = arith.addf %29, %31 : vector<32x256xf32>
    %cst_18 = arith.constant 0.000000e+00 : f32
    %33 = vector.broadcast %cst_18 : f32 to vector<32x256xf32>
    %34 = arith.maximumf %32, %33 : vector<32x256xf32>
    %c0_19 = arith.constant 0 : index
    %c0_20 = arith.constant 0 : index
    %35 = vector.load %arg8[%c0_19, %c0_20] : memref<16x32xf32, #tpu.memory_space<vmem>>, vector<16x32xf32>
    %cst_21 = arith.constant dense<0.000000e+00> : vector<16x256xf32>
    %36 = tpu.matmul %35, %34, %cst_21 {dimension_numbers = #tpu.dot_dimension_numbers<[1], [0], [0], [1], [0, 0, 1, 1], [], []>} : vector<16x32xf32>, vector<32x256xf32>, vector<16x256xf32> -> vector<16x256xf32>
    %c0_22 = arith.constant 0 : index
    %c0_23 = arith.constant 0 : index
    %37 = vector.load %arg9[%c0_22, %c0_23] : memref<16x1xf32, #tpu.memory_space<vmem>>, vector<16x1xf32>
    %38 = vector.broadcast %37 : vector<16x1xf32> to vector<16x256xf32>
    %39 = arith.addf %36, %38 : vector<16x256xf32>
    %cst_24 = arith.constant 0.000000e+00 : f32
    %40 = vector.broadcast %cst_24 : f32 to vector<16x256xf32>
    %41 = arith.maximumf %39, %40 : vector<16x256xf32>
    %c0_25 = arith.constant 0 : index
    %c0_26 = arith.constant 0 : index
    %42 = vector.load %arg10[%c0_25, %c0_26] : memref<4x16xf32, #tpu.memory_space<vmem>>, vector<4x16xf32>
    %cst_27 = arith.constant dense<0.000000e+00> : vector<4x256xf32>
    %43 = tpu.matmul %42, %41, %cst_27 {dimension_numbers = #tpu.dot_dimension_numbers<[1], [0], [0], [1], [0, 0, 1, 1], [], []>} : vector<4x16xf32>, vector<16x256xf32>, vector<4x256xf32> -> vector<4x256xf32>
    %c0_28 = arith.constant 0 : index
    %c0_29 = arith.constant 0 : index
    %44 = vector.load %arg11[%c0_28, %c0_29] : memref<4x1xf32, #tpu.memory_space<vmem>>, vector<4x1xf32>
    %45 = vector.broadcast %44 : vector<4x1xf32> to vector<4x256xf32>
    %46 = arith.addf %43, %45 : vector<4x256xf32>
    %c0_30 = arith.constant 0 : index
    %c0_31 = arith.constant 0 : index
    %47 = vector.load %arg12[%c0_30, %c0_31] : memref<4x256xf32, #tpu.memory_space<vmem>>, vector<4x256xf32>
    tpu.vector_store %arg12[%c0_30, %c0_31], %46 {strides = array<i32>} : memref<4x256xf32, #tpu.memory_space<vmem>>, vector<4x256xf32>,
    return
  }
  func.func @transform_0(%arg0: i32) -> (i32, i32) {
    %c0_i32 = arith.constant 0 : i32
    %c0_i32_0 = arith.constant 0 : i32
    return %c0_i32, %arg0 : i32, i32
  }
  func.func @transform_1(%arg0: i32) -> (i32, i32) {
    %c0_i32 = arith.constant 0 : i32
    %c0_i32_0 = arith.constant 0 : i32
    return %c0_i32, %arg0 : i32, i32
  }
  func.func @transform_2(%arg0: i32) -> (i32, i32) {
    %c0_i32 = arith.constant 0 : i32
    %c0_i32_0 = arith.constant 0 : i32
    %c0_i32_1 = arith.constant 0 : i32
    return %c0_i32, %c0_i32_0 : i32, i32
  }
  func.func @transform_3(%arg0: i32) -> (i32, i32) {
    %c0_i32 = arith.constant 0 : i32
    %c0_i32_0 = arith.constant 0 : i32
    %c0_i32_1 = arith.constant 0 : i32
    return %c0_i32, %c0_i32_0 : i32, i32
  }
  func.func @transform_4(%arg0: i32) -> (i32, i32) {
    %c0_i32 = arith.constant 0 : i32
    %c0_i32_0 = arith.constant 0 : i32
    %c0_i32_1 = arith.constant 0 : i32
    return %c0_i32, %c0_i32_0 : i32, i32
  }
  func.func @transform_5(%arg0: i32) -> (i32, i32) {
    %c0_i32 = arith.constant 0 : i32
    %c0_i32_0 = arith.constant 0 : i32
    %c0_i32_1 = arith.constant 0 : i32
    return %c0_i32, %c0_i32_0 : i32, i32
  }
  func.func @transform_6(%arg0: i32) -> (i32, i32) {
    %c0_i32 = arith.constant 0 : i32
    %c0_i32_0 = arith.constant 0 : i32
    %c0_i32_1 = arith.constant 0 : i32
    return %c0_i32, %c0_i32_0 : i32, i32
  }
  func.func @transform_7(%arg0: i32) -> (i32, i32) {
    %c0_i32 = arith.constant 0 : i32
    %c0_i32_0 = arith.constant 0 : i32
    %c0_i32_1 = arith.constant 0 : i32
    return %c0_i32, %c0_i32_0 : i32, i32
  }
  func.func @transform_8(%arg0: i32) -> (i32, i32) {
    %c0_i32 = arith.constant 0 : i32
    %c0_i32_0 = arith.constant 0 : i32
    %c0_i32_1 = arith.constant 0 : i32
    return %c0_i32, %c0_i32_0 : i32, i32
  }
  func.func @transform_9(%arg0: i32) -> (i32, i32) {
    %c0_i32 = arith.constant 0 : i32
    %c0_i32_0 = arith.constant 0 : i32
    %c0_i32_1 = arith.constant 0 : i32
    return %c0_i32, %c0_i32_0 : i32, i32
  }
  func.func @transform_10(%arg0: i32) -> (i32, i32) {
    %c0_i32 = arith.constant 0 : i32
    %c0_i32_0 = arith.constant 0 : i32
    %c0_i32_1 = arith.constant 0 : i32
    return %c0_i32, %c0_i32_0 : i32, i32
  }
  func.func @transform_11(%arg0: i32) -> (i32, i32) {
    %c0_i32 = arith.constant 0 : i32
    %c0_i32_0 = arith.constant 0 : i32
    return %c0_i32, %arg0 : i32, i32
  }
}

</mosaic_0001>

<bundles_post_ra>
// kernel: tabular_forward.1
= control target key start
LH: loop header
LB: loop body
LE: loop exit
PB: predicated region body
PF: predicated region fallthrough
CT: control target
= control target key end

     0   :  { %vm194_vm0 = vcmask 1044480   ;;  %v45_v0 = vlaneseq  ;;  %v901_v3 = vmov 0.0   ;;  %vm181_vm1 = vcmask 39936   ;;  %s1135_s1 = inlined_call_operand.vmem [shape: f32[5,256], index: 1, kind: input, shape index: {}]   ;;  %s1136_s2 = inlined_call_operand.vmem [shape: f32[32,5], index: 2, kind: input, shape index: {}]   ;;  %s1137_s0 = inlined_call_operand.vmem [shape: s32[3,256], index: 0, kind: input, shape index: {}]   ;;  %s1138_s3 = inlined_call_operand.vmem [shape: f32[32,1], index: 3, kind: input, shape index: {}]   ;;  %s1139_s4 = inlined_call_operand.vmem [shape: f32[32,10], index: 4, kind: input, shape index: {}]   ;;  %s1140_s5 = inlined_call_operand.vmem [shape: f32[32,12], index: 5, kind: input, shape index: {}]   ;;  %s1141_s8 = inlined_call_operand.vmem [shape: f32[16,1], index: 8, kind: input, shape index: {}]   ;;  %s1142_s10 = inlined_call_operand.vmem [shape: f32[4,1], index: 10, kind: input, shape index: {}]   ;;  %s1143_s6 = inlined_call_operand.vmem [shape: f32[32,7], index: 6, kind: input, shape index: {}]   ;;  %s1144_s7 = inlined_call_operand.vmem [shape: f32[16,32], index: 7, kind: input, shape index: {}]   ;;  %s1145_s9 = inlined_call_operand.vmem [shape: f32[4,16], index: 9, kind: input, shape index: {}]   ;;  %s1146_s11 = inlined_call_operand.vmem [shape: f32[4,256], index: 11, kind: output, shape index: {}]  }
   0x1   :  { %v967_v1 = vld [vmem:[%s1135_s1 + $0x8] sm:$0x1f]  ;;  %v972_v2 = vld [vmem:[%s1135_s1] sm:$0x1f]  ;;  %265 = vmatprep.mubr.f32.mxu0 %v901_v3  ;;  %156 = vmatprep.mubr.f32.mxu1 %v901_v3  ;;  %vm85_vm2 = vcmask 1041408   ;;  %vm329_vm3 = vcmask 1043456  }
   0x2   :  { %v40_v4 = vld [vmem:[%s1136_s2] sm:$0xff]  ;;  %815 = vmatprep.subr.msk.mxu0 %vm194_vm0, %v967_v1  ;;  %v46_v5 = vshrl.u32 %v45_v0, 7  ;;  %v41_v11 = vld [vmem:[%s1136_s2 + $0x8] sm:$0xff]  ;;  %v902_v21 = vmov 0   ;;  %v903_v23 = vmov 1.0   ;;  %v572_v28 = vld [vmem:[%s1138_s3 + $0x10] sm:$0xff] }
   0x3   :  { %816 = vmatpush1.msk.msra.mxu0 %vm194_vm0, %v972_v2  ;;  %v44_v6 = vld [vmem:[%s1137_s0] ss:$4 sm:$0x3]  ;;  %v821_v7 = vld [vmem:[%s1137_s0 + $0x1] ss:$4 sm:$0x3]  ;;  %899 = vset.pattern.permute.xlu0 %v902_v21 }
   0x4   :  { %817 = vmatmul.mubr.msk.f32.vlgmr.msra.gmra.mrb[0].mxu0 %vm181_vm1, %v40_v4  ;;  %v47_v8 = vadd.s32 8, %v46_v5  ;;  %v54_v9 = vsub.s32 1, %v46_v5  ;;  %v50_v10 = vsub.s32 0, %v46_v5  ;;  %v834_v12 = vld [vmem:[%s1137_s0 + $0x2] ss:$4 sm:$0x3]  ;;  %900 = vset.pattern.permute.xlu1 %v902_v21 }
   0x5   :  { %271 = vmatprep.mubr.f32.mxu0 %v901_v3  ;;  %v570_v22 = vld [vmem:[%s1138_s3] sm:$0xff]  ;;  %586 = vperm.xlu1 %900, %v572_v28   ;;  %v571_v35 = vld [vmem:[%s1138_s3 + $0x8] sm:$0xff]  ;;  %v573_v36 = vld [vmem:[%s1138_s3 + $0x18] sm:$0xff] }
   0x6   :  { %v55_v13 = vrot.slane %v44_v6, %v54_v9  ;;  %v295_v14 = vrot.slane %v821_v7, %v50_v10  ;;  %v299_v15 = vrot.slane %v821_v7, %v54_v9  ;;  %v51_v16 = vrot.slane %v44_v6, %v50_v10  ;;  %576 = vperm.xlu0 %899, %v570_v22   ;;  %v68_v37 = vld [vmem:[%s1139_s4] sm:$0xff]  ;;  %v613_v41 = vld [vmem:[%s1141_s8 + $0x8] sm:$0xff]  ;;  %v70_v45 = vld [vmem:[%s1139_s4 + $0x10] sm:$0xff] }
   0x7   :  { %v438_v17 = vrot.slane %v834_v12, %v50_v10  ;;  %v442_v18 = vrot.slane %v834_v12, %v54_v9  ;;  %v312_v38 = vld [vmem:[%s1140_s5] sm:$0xff]  ;;  %v69_v42 = vld [vmem:[%s1139_s4 + $0x8] sm:$0xff]  ;;  %v314_v46 = vld [vmem:[%s1140_s5 + $0x10] sm:$0xff] }
   0x8   :  { %vm57_vm4 = vcmp.eq.s32.totalorder %v46_v5, %v55_v13  ;;  %vm59_vm5 = vcmp.eq.s32.totalorder %v47_v8, %v55_v13  ;;  %818 = vmatmul.mubr.msk.f32.gmra.mrb[2].mxu0 %vm181_vm1, %v41_v11  ;;  %vm300_vm6 = vcmp.eq.s32.totalorder %v46_v5, %v295_v14  ;;  %vm301_vm7 = vcmp.eq.s32.totalorder %v46_v5, %v299_v15  ;;  %v612_v40 = vld [vmem:[%s1141_s8] sm:$0xff]  ;;  %v313_v43 = vld [vmem:[%s1140_s5 + $0x8] sm:$0xff]  ;;  %v71_v47 = vld [vmem:[%s1139_s4 + $0x18] sm:$0xff] }
   0x9   :  { %v806_v19 = vsel %vm59_vm5, 1.0, %v901_v3  ;;  %vm1000_vm8 = vmpackc.low %vm85_vm2, %vm57_vm4  ;;  %vm302_vm9 = vcmp.eq.s32.totalorder %v47_v8, %v295_v14  ;;  %vm303_vm10 = vcmp.eq.s32.totalorder %v47_v8, %v299_v15  ;;  %vm56_vm11 = vcmp.eq.s32.totalorder %v46_v5, %v51_v16  ;;  %400 = vmatprep.mubr.f32.mxu0 %v901_v3  ;;  %591 = vperm.xlu1 %900, %v573_v36   ;;  %v713_v44 = vld [vmem:[%s1142_s10] sm:$0xf]  ;;  %v315_v48 = vld [vmem:[%s1140_s5 + $0x18] sm:$0xff] }
   0xa   :  { %v846_v24 = vpack.c.bf16 %v806_v19, %v903_v23  ;;  %v824_v25 = vsel %vm302_vm9, 1.0, %v901_v3  ;;  %v825_v26 = vsel %vm303_vm10, 1.0, %v901_v3  ;;  %vm1011_vm12 = vmpackc.low %vm329_vm3, %vm301_vm7  ;;  %vm58_vm13 = vcmp.eq.s32.totalorder %v47_v8, %v51_v16  ;;  %581 = vperm.xlu0 %899, %v571_v35   ;;  %v42_v49 = vld [vmem:[%s1136_s2 + $0x10] sm:$0xff]  ;;  %v449_v50 = vld [vmem:[%s1143_s6] sm:$0xff] }
   0xb   :  { %v852_v29 = vpack.c.bf16 %v825_v26, %v903_v23  ;;  %vm1020_vm14 = vmpackc.low %vm329_vm3, %vm300_vm6  ;;  %v805_v31 = vsel %vm58_vm13, 1.0, %v901_v3  ;;  %v855_v32 = vpack.c.bf16 %v824_v25, %v903_v23  ;;  %vm444_vm15 = vcmp.eq.s32.totalorder %v46_v5, %v442_v18  ;;  %v43_v51 = vld [vmem:[%s1136_s2 + $0x18] sm:$0xff]  ;;  %v450_v52 = vld [vmem:[%s1143_s6 + $0x8] sm:$0xff] }
   0xc   :  { %848 = vmatprep.subr.msk.bf16.mxu1 %vm1000_vm8, %v846_v24  ;;  %v849_v33 = vpack.c.bf16 %v805_v31, %v903_v23  ;;  %vm850_vm4 = vmpackc.low %vm85_vm2, %vm56_vm11  ;;  %v836_v34 = vsel %vm444_vm15, 1.0, %v901_v3  ;;  %vm466_vm5 = vcmask 1046528   ;;  %vm443_vm3 = vcmp.eq.s32.totalorder %v46_v5, %v438_v17  ;;  %v451_v53 = vld [vmem:[%s1143_s6 + $0x10] sm:$0xff]  ;;  %v452_v54 = vld [vmem:[%s1143_s6 + $0x18] sm:$0xff] }
   0xd   :  { %854 = vmatprep.subr.msk.bf16.mxu0 %vm1011_vm12, %v852_v29  ;;  %vm72_vm2 = vcmask 80896   ;;  %vm316_vm6 = vcmask 97280   ;;  %v835_v39 = vsel %vm443_vm3, 1.0, %v901_v3  ;;  %621 = vperm.xlu1 %900, %v613_v41   ;;  %v611_v41 = vld [vmem:[%s1144_s7 + $0x8] sm:$0xff]  ;;  %vm719_vm7 = vcmask 130048  }
   0xe   :  { %851 = vmatpush1.bf16.msk.msra.mxu1 %vm850_vm4, %v849_v33  ;;  %857 = vmatpush1.bf16.msk.msra.mxu0 %vm1020_vm14, %v855_v32 }
   0xf   :  { %837 = vmatprep.subr.msk.mxu0 %vm466_vm5, %v836_v34  ;;  %870 = vmatprep.subr.msk.mxu1 %vm194_vm0, %v967_v1 }
  0x10   :  { %616 = vperm.xlu0 %899, %v612_v40   ;;  %v610_v40 = vld [vmem:[%s1144_s7] sm:$0xff] }
  0x11   :  { %811 = vmatmul.mubr.msk.f32.vlgmr.msra.gmra.mrb[0].mxu1 %vm72_vm2, %v68_v37  ;;  %830 = vmatmul.mubr.msk.f32.vlgmr.msra.gmra.mrb[0].mxu0 %vm316_vm6, %v312_v38 }
  0x12   :  { %162 = vmatprep.mubr.f32.mxu1 %v901_v3  ;;  %406 = vmatprep.mubr.f32.mxu0 %v901_v3 }
  0x13   :  { %838 = vmatpush1.msk.msra.mxu0 %vm466_vm5, %v835_v39  ;;  %871 = vmatpush1.msk.msra.mxu1 %vm194_vm0, %v972_v2  ;;  %vm453_vm0 = vcmask 56320  }
  0x14   :  { %716 = vperm.xlu0 %899, %v713_v44  }
  0x15   :  { %812 = vmatmul.mubr.msk.f32.gmra.mrb[2].mxu1 %vm72_vm2, %v69_v42  ;;  %831 = vmatmul.mubr.msk.f32.gmra.mrb[2].mxu0 %vm316_vm6, %v313_v43 }
  0x16   :  { %168 = vmatprep.mubr.f32.mxu1 %v901_v3  ;;  %412 = vmatprep.mubr.f32.mxu0 %v901_v3 }
  0x19   :  { %813 = vmatmul.mubr.msk.f32.gmra.mrb[4].mxu1 %vm72_vm2, %v70_v45  ;;  %832 = vmatmul.mubr.msk.f32.gmra.mrb[4].mxu0 %vm316_vm6, %v314_v46 }
  0x1a   :  { %174 = vmatprep.mubr.f32.mxu1 %v901_v3  ;;  %418 = vmatprep.mubr.f32.mxu0 %v901_v3 }
  0x1d   :  { %814 = vmatmul.mubr.msk.f32.gmra.mrb[6].mxu1 %vm72_vm2, %v71_v47  ;;  %833 = vmatmul.mubr.msk.f32.gmra.mrb[6].mxu0 %vm316_vm6, %v315_v48 }
  0x1e   :  { %277 = vmatprep.mubr.f32.mxu1 %v901_v3  ;;  %537 = vmatprep.mubr.f32.mxu0 %v901_v3 }
  0x21   :  { %819 = vmatmul.mubr.msk.f32.vlgmr.msra.gmra.mrb[4].mxu1 %vm181_vm1, %v42_v49  ;;  %839 = vmatmul.mubr.msk.f32.vlgmr.msra.gmra.mrb[0].mxu0 %vm453_vm0, %v449_v50 }
  0x22   :  { %283 = vmatprep.mubr.f32.mxu1 %v901_v3  ;;  %543 = vmatprep.mubr.f32.mxu0 %v901_v3 }
  0x25   :  { %820 = vmatmul.mubr.msk.f32.gmra.mrb[6].mxu1 %vm181_vm1, %v43_v51  ;;  %840 = vmatmul.mubr.msk.f32.gmra.mrb[2].mxu0 %vm453_vm0, %v450_v52  ;;  %vm624_vm1 = vcmask 261120  }
  0x26   :  { %549 = vmatprep.mubr.f32.mxu0 %v901_v3  ;;  %695 = vmatprep.mubr.f32.mxu1 %v901_v3 }
  0x29   :  { %841 = vmatmul.mubr.msk.f32.gmra.mrb[4].mxu0 %vm453_vm0, %v451_v53 }
  0x2a   :  { %555 = vmatprep.mubr.f32.mxu0 %v901_v3 }
  0x2d   :  { %842 = vmatmul.mubr.msk.f32.gmra.mrb[6].mxu0 %vm453_vm0, %v452_v54 }
  0x84   :  { %v587_v13 = vpop.permute.xlu1 %586 }
  0x85   :  { %v577_v59 = vpop.permute.xlu0 %576 }
  0x88   :  { %v592_v29 = vpop.permute.xlu1 %591 }
  0x89   :  { %v582_v9 = vpop.permute.xlu0 %581 }
  0x8c   :  { %v622_v46 = vpop.permute.xlu1 %621 }
  0x8f   :  { %v617_v44 = vpop.permute.xlu0 %616 }
  0xe4   :  { %v158_v55 = vpop.f32.mrb[0].mxu1 }
  0xe5   :  { %v160_v56 = vpop.f32.mrb[1].mxu1 }
  0xe8   :  { %v164_v57 = vpop.f32.mrb[2].mxu1 }
  0xe9   :  { %v166_v58 = vpop.f32.mrb[3].mxu1 }
  0xf4   :  { %v279_v60 = vpop.f32.mrb[4].mxu1  ;;  %v539_v61 = vpop.f32.mrb[0].mxu0 }
  0xf5   :  { %v872_v62 = vadd.f32 %v539_v61, %v158_v55  ;;  %v281_v63 = vpop.f32.mrb[5].mxu1  ;;  %v541_v0 = vpop.f32.mrb[1].mxu0 }
  0xf6   :  { %v873_v1 = vadd.f32 %v541_v0, %v160_v56 }
  0xf7   :  { %v594_v5 = vadd.f32 %v872_v62, %v577_v59 }
  0xf8   :  { %v285_v2 = vpop.f32.mrb[6].mxu1  ;;  %v545_v4 = vpop.f32.mrb[2].mxu0  ;;  %v595_v10 = vadd.f32 %v873_v1, %v577_v59 }
  0xf9   :  { %v874_v6 = vadd.f32 %v545_v4, %v164_v57  ;;  %v287_v7 = vpop.f32.mrb[7].mxu1  ;;  %v547_v8 = vpop.f32.mrb[3].mxu0  ;;  %v602_v16 = vmax.f32 %v594_v5, 0.0 }
  0xfa   :  { %v875_v11 = vadd.f32 %v547_v8, %v166_v58  ;;  %v603_v20 = vmax.f32 %v595_v10, 0.0  ;;  %v717_v58 = vpop.permute.xlu0 %716 }
  0xfb   :  { %v596_v12 = vadd.f32 %v874_v6, %v582_v9 }
  0xfc   :  { %v597_v14 = vadd.f32 %v875_v11, %v582_v9  ;;  %v551_v15 = vpop.f32.mrb[4].mxu0 }
  0xfd   :  { %v604_v17 = vmax.f32 %v596_v12, 0.0  ;;  %v876_v18 = vadd.f32 %v551_v15, %v279_v60  ;;  %v553_v19 = vpop.f32.mrb[5].mxu0 }
  0xfe   :  { %v605_v21 = vmax.f32 %v597_v14, 0.0  ;;  %v877_v22 = vadd.f32 %v553_v19, %v281_v63 }
  0xff   :  { %v860_v23 = vpack.c.bf16 %v604_v17, %v602_v16  ;;  %v598_v26 = vadd.f32 %v876_v18, %v587_v13 }
 0x100   :  { %v557_v24 = vpop.f32.mrb[6].mxu0  ;;  %v858_v25 = vpack.c.bf16 %v605_v21, %v603_v20  ;;  %v599_v30 = vadd.f32 %v877_v22, %v587_v13 }
 0x101   :  { %v878_v27 = vadd.f32 %v557_v24, %v285_v2  ;;  %v559_v28 = vpop.f32.mrb[7].mxu0  ;;  %v606_v34 = vmax.f32 %v598_v26, 0.0 }
 0x102   :  { %v879_v31 = vadd.f32 %v559_v28, %v287_v7  ;;  %859 = vmatprep.subr.bf16.mxu1 %v858_v25  ;;  %v607_v36 = vmax.f32 %v599_v30, 0.0 }
 0x103   :  { %v600_v32 = vadd.f32 %v878_v27, %v592_v29  ;;  %861 = vmatpush1.bf16.msra.mxu1 %v860_v23 }
 0x104   :  { %v601_v33 = vadd.f32 %v879_v31, %v592_v29 }
 0x105   :  { %v608_v35 = vmax.f32 %v600_v32, 0.0 }
 0x106   :  { %v609_v37 = vmax.f32 %v601_v33, 0.0 }
 0x107   :  { %v864_v38 = vpack.c.bf16 %v608_v35, %v606_v34 }
 0x108   :  { %v862_v39 = vpack.c.bf16 %v609_v37, %v607_v36 }
 0x10a   :  { %863 = vmatprep.subr.bf16.mxu1 %v862_v39 }
 0x10b   :  { %865 = vmatpush1.bf16.msra.mxu1 %v864_v38 }
 0x10e   :  { %843 = vmatmul.mubr.msk.f32.vlgmr.msra.gmra.mrb[8].mxu1 %vm624_vm1, %v610_v40 }
 0x10f   :  { %701 = vmatprep.mubr.f32.mxu1 %v901_v3 }
 0x112   :  { %844 = vmatmul.mubr.msk.f32.gmra.mrb[10].mxu1 %vm624_vm1, %v611_v41 }
 0x113   :  { %787 = vmatprep.mubr.f32.mxu1 %v901_v3  ;;  %v712_v3 = vld [vmem:[%s1145_s9] sm:$0xf] }
 0x1e1   :  { %v697_v42 = vpop.f32.mrb[8].mxu1 }
 0x1e2   :  { %v699_v43 = vpop.f32.mrb[9].mxu1  ;;  %v698_v45 = vadd.f32 %v697_v42, %v617_v44 }
 0x1e3   :  { %v700_v47 = vadd.f32 %v699_v43, %v617_v44 }
 0x1e4   :  { %v708_v52 = vmax.f32 %v698_v45, 0.0 }
 0x1e5   :  { %v703_v48 = vpop.f32.mrb[10].mxu1  ;;  %v709_v54 = vmax.f32 %v700_v47, 0.0 }
 0x1e6   :  { %v704_v49 = vadd.f32 %v703_v48, %v622_v46  ;;  %v705_v50 = vpop.f32.mrb[11].mxu1 }
 0x1e7   :  { %v706_v51 = vadd.f32 %v705_v50, %v622_v46 }
 0x1e8   :  { %v710_v53 = vmax.f32 %v704_v49, 0.0 }
 0x1e9   :  { %v711_v55 = vmax.f32 %v706_v51, 0.0 }
 0x1ea   :  { %v868_v56 = vpack.c.bf16 %v710_v53, %v708_v52 }
 0x1eb   :  { %v866_v57 = vpack.c.bf16 %v711_v55, %v709_v54 }
 0x1ed   :  { %867 = vmatprep.subr.bf16.mxu1 %v866_v57 }
 0x1ee   :  { %869 = vmatpush1.bf16.msra.mxu1 %v868_v56 }
 0x1f1   :  { %845 = vmatmul.mubr.msk.f32.vlgmr.msra.gmra.mrb[12].mxu1 %vm719_vm7, %v712_v3 }
 0x2c4   :  { %v789_v59 = vpop.f32.mrb[12].mxu1 }
 0x2c5   :  { %v790_v60 = vadd.f32 %v789_v59, %v717_v58  ;;  %v791_v61 = vpop.f32.mrb[13].mxu1 }
 0x2c6   :  { %v792_v62 = vadd.f32 %v791_v61, %v717_v58 }
 0x2c8   :  { %v796_v63 = vcombine.low %v790_v60, %v792_v62 }
 0x2ca   :  { %798 = vst [vmem:[%s1146_s11] sm:$0xff] %v796_v63 }

</bundles_post_ra>
